<compile_context>
chip_gen: v5e
topology: v5e:2x2
jax: 0.10.0
libtpu: 0.0.40
codegen_flags: <defaults>
</compile_context>

<pallas_src>
import jax
import jax.numpy as jnp
import numpy as np
from jax.experimental import pallas as pl
from jax.experimental.pallas import tpu as pltpu

LANE = 128
ROW_BLOCK_MAX = 512   # 512 rows * 128 lanes = 65536 points per grid step


# ----------------------------- Pallas kernel -------------------------------
def _reproj_kernel(params_ref, pts_ref, kp_ref, out_ref):
    # params_ref (SMEM, scalar-prefetched, 28 f32):
    #   [R1 (9, row-major), t1 (3), R2 (9), t2 (3), fx, fy, cx, cy]
    # pts_ref : (3, R, 128) world points, rows = [x, y, z]
    # kp_ref  : (6, R, 128) observations, rows = [u1, v1, d1, u2, v2, d2]
    # out_ref : (6, R, 128) residuals,    rows = [u1e, v1e, d1e, u2e, v2e, d2e]
    fx = params_ref[24]
    fy = params_ref[25]
    cx = params_ref[26]
    cy = params_ref[27]

    # unrolled over the two frames (pose2fix, pose2opt)
    for frame in (0, 1):
        base = 12 * frame
        r00 = params_ref[base + 0]; r01 = params_ref[base + 1]; r02 = params_ref[base + 2]
        r10 = params_ref[base + 3]; r11 = params_ref[base + 4]; r12 = params_ref[base + 5]
        r20 = params_ref[base + 6]; r21 = params_ref[base + 7]; r22 = params_ref[base + 8]
        tx = params_ref[base + 9]; ty = params_ref[base + 10]; tz = params_ref[base + 11]

        # Re-load x/y/z per frame: keeps live ranges short when R is large; the
        # extra vld's sit in otherwise-idle load slots.
        x = pts_ref[0]
        y = pts_ref[1]
        z = pts_ref[2]

        # camera-frame (NED) coordinates: p_cam = R_inv @ p_w + t_inv
        px = r00 * x + r01 * y + r02 * z + tx   # forward (depth)
        py = r10 * x + r11 * y + r12 * z + ty   # right
        pz = r20 * x + r21 * y + r22 * z + tz   # down

        inv_depth = 1.0 / px                    # exact, matches torch division

        row0 = 3 * frame
        out_ref[row0 + 0] = fx * py * inv_depth + cx - kp_ref[row0 + 0]  # full (R,128) stores
        out_ref[row0 + 1] = fy * pz * inv_depth + cy - kp_ref[row0 + 1]
        out_ref[row0 + 2] = px - kp_ref[row0 + 2]


# ----------------------------- host-side helpers -----------------------------
def _quat_to_rotmat(q):
    # q = (qx, qy, qz, qw), pypose SE3 convention
    qx, qy, qz, qw = q[0], q[1], q[2], q[3]
    return jnp.array([
        [1 - 2 * (qy * qy + qz * qz), 2 * (qx * qy - qz * qw),     2 * (qx * qz + qy * qw)],
        [2 * (qx * qy + qz * qw),     1 - 2 * (qx * qx + qz * qz), 2 * (qy * qz - qx * qw)],
        [2 * (qx * qz - qy * qw),     2 * (qy * qz + qx * qw),     1 - 2 * (qx * qx + qy * qy)],
    ], dtype=jnp.float32)


def _se3_inv_rt(pose7):
    # pose7 = [tx, ty, tz, qx, qy, qz, qw]; returns (R_inv, t_inv) of SE3 inverse
    t = pose7[:3].astype(jnp.float32)
    R = _quat_to_rotmat(pose7[3:7].astype(jnp.float32))
    R_inv = R.T
    t_inv = -(R_inv @ t)
    return R_inv, t_inv


def _round_up(x, m):
    return ((x + m - 1) // m) * m


def _choose_blocking(rows_needed):
    """Pick (r_block, rows_total): r_block multiple of 8, <= ROW_BLOCK_MAX,
    with >= 2 grid steps when there is enough work (v7x megacore), and
    minimal padding for mid-size N."""
    if rows_needed <= 8:
        return 8, 8                                  # single tiny step
    k = max(2, pl.cdiv(rows_needed, ROW_BLOCK_MAX))  # smallest step count >= 2
    r_block = _round_up(pl.cdiv(rows_needed, k), 8)
    rows_total = _round_up(rows_needed, r_block)
    return r_block, rows_total


def pack_params(pose2fix, pose2opt, K):
    """(28,) f32: [R1_inv(9), t1_inv(3), R2_inv(9), t2_inv(3), fx, fy, cx, cy]."""
    R1, t1 = _se3_inv_rt(pose2fix)
    R2, t2 = _se3_inv_rt(pose2opt)
    intr = jnp.array([K[0, 0], K[1, 1], K[0, 2], K[1, 2]], dtype=jnp.float32)
    return jnp.concatenate(
        [R1.reshape(-1), t1, R2.reshape(-1), t2, intr]).astype(jnp.float32)


def pack_points(pos_Tw, rows_total):
    """(3, rows_total, 128) lane-dense world points; padded lanes get x = 1."""
    N = pos_Tw.shape[0]
    n_pad = rows_total * LANE
    pts2d = pos_Tw.T.astype(jnp.float32)                       # (3, N)
    pad = n_pad - N
    if pad:
        pad_slab = jnp.concatenate(
            [jnp.ones((1, pad), jnp.float32),                  # x = 1 -> no div-by-zero
             jnp.zeros((2, pad), jnp.float32)], axis=0)
        pts2d = jnp.concatenate([pts2d, pad_slab], axis=1)
    return pts2d.reshape(3, rows_total, LANE)


def pack_observations(kp1, kp2, kp1_depth, kp2_depth, rows_total):
    """(6, rows_total, 128) fused observation slab: rows [u1, v1, d1, u2, v2, d2].
    Constant across BA solver iterations -> compute once and cache."""
    N = kp1.shape[0]
    n_pad = rows_total * LANE
    kp_rows = jnp.stack(
        [kp1[:, 0], kp1[:, 1], kp1_depth,
         kp2[:, 0], kp2[:, 1], kp2_depth], axis=0).astype(jnp.float32)  # (6, N)
    kp_rows = jnp.pad(kp_rows, ((0, 0), (0, n_pad - N)))
    return kp_rows.reshape(6, rows_total, LANE)


def pose_graph_depth_residuals_packed(params, pts, kp, r_block):
    """Kernel call on pre-packed inputs; returns lane-dense (6, rows_total, 128)
    residual slab (rows [u1e, v1e, d1e, u2e, v2e, d2e])."""
    rows_total = pts.shape[1]
    grid = (rows_total // r_block,)
    return pl.pallas_call(
        _reproj_kernel,
        out_shape=jax.ShapeDtypeStruct((6, rows_total, LANE), jnp.float32),
        grid_spec=pltpu.PrefetchScalarGridSpec(
            num_scalar_prefetch=1,                       # params -> SMEM, staged once
            grid=grid,
            in_specs=[
                pl.BlockSpec((3, r_block, LANE), lambda i, p: (0, i, 0)),  # points
                pl.BlockSpec((6, r_block, LANE), lambda i, p: (0, i, 0)),  # observations
            ],
            out_specs=pl.BlockSpec((6, r_block, LANE), lambda i, p: (0, i, 0)),
        ),
        compiler_params=pltpu.CompilerParams(dimension_semantics=("parallel",)),
    )(params, pts, kp)


def pose_graph_depth_forward(pose2fix, pose2opt, pos_Tw, K, kp1, kp2, kp1_depth, kp2_depth):
    """Returns the (2N, 3) residual tensor of PoseGraph_withDepthConstraint.forward().

    Convenience wrapper honouring the PyTorch layout contract. A BA solver loop
    should instead cache pack_observations(...) once and consume the lane-dense
    output of pose_graph_depth_residuals_packed(...) directly, skipping the
    final transpose/concatenate HBM pass below.
    """
    N = pos_Tw.shape[0]
    rows_needed = pl.cdiv(N, LANE)
    r_block, rows_total = _choose_blocking(rows_needed)

    params = pack_params(pose2fix, pose2opt, K)
    pts = pack_points(pos_Tw, rows_total)
    kp = pack_observations(kp1, kp2, kp1_depth, kp2_depth, rows_total)

    out = pose_graph_depth_residuals_packed(params, pts, kp, r_block)

    # Relayout back to the PyTorch (2N, 3) convention.
    out2d = out.reshape(6, rows_total * LANE)
    err1 = out2d[0:3, :N].T   # (N, 3): [u_err, v_err, depth_err] in frame-fix
    err2 = out2d[3:6, :N].T   # (N, 3): same in frame-opt
    return jnp.concatenate([err1, err2], axis=0)  # (2N, 3)


# ----------------------------- pure-JAX reference ----------------------------
def _reference(pose2fix, pose2opt, pos_Tw, K, kp1, kp2, kp1_depth, kp2_depth):
    def act_inv(pose7, pts):
        R, t = _se3_inv_rt(pose7)
        return pts @ R.T + t

    def point2pixel_ned(p_cam, K):
        u = K[0, 0] * p_cam[:, 1] / p_cam[:, 0] + K[0, 2]
        v = K[1, 1] * p_cam[:, 2] / p_cam[:, 0] + K[1, 2]
        return jnp.stack([u, v], axis=-1)

    P1 = act_inv(pose2fix, pos_Tw)
    P2 = act_inv(pose2opt, pos_Tw)
    r1 = point2pixel_ned(P1, K) - kp1
    r2 = point2pixel_ned(P2, K) - kp2
    d1 = P1[:, 0] - kp1_depth
    d2 = P2[:, 0] - kp2_depth
    return jnp.concatenate(
        [jnp.concatenate([r1, r2], axis=0),
         jnp.concatenate([d1, d2], axis=0)[:, None]], axis=1)


# ----------------------------- main ------------------------------------------
if __name__ == "__main__":
    key = jax.random.PRNGKey(0)
    k1, k2, k3, k4, k5, k6, k7, k8 = jax.random.split(key, 8)

    N = 64  # number of observed points

    def make_pose(kk):
        kt, kq = jax.random.split(kk)
        t = jax.random.uniform(kt, (3,), jnp.float32, -1.0, 1.0)
        q = jax.random.normal(kq, (4,), jnp.float32)
        q = q / jnp.linalg.norm(q)
        return jnp.concatenate([t, q])  # [tx, ty, tz, qx, qy, qz, qw]

    pose2fix = make_pose(k1)
    pose2opt = make_pose(k2)

    # world points: NED-forward (x) between 5 and 10 so depth stays positive
    pos_Tw = jnp.concatenate(
        [jax.random.uniform(k3, (N, 1), jnp.float32, 5.0, 10.0),
         jax.random.uniform(k4, (N, 2), jnp.float32, -2.0, 2.0)], axis=1)

    K = jnp.array([[320.0, 0.0, 320.0],
                   [0.0, 320.0, 240.0],
                   [0.0, 0.0, 1.0]], jnp.float32)

    kp1 = jax.random.uniform(k5, (N, 2), jnp.float32, 0.0, 640.0)
    kp2 = jax.random.uniform(k6, (N, 2), jnp.float32, 0.0, 640.0)
    kp1_depth = jax.random.uniform(k7, (N,), jnp.float32, 4.0, 11.0)
    kp2_depth = jax.random.uniform(k8, (N,), jnp.float32, 4.0, 11.0)

    out = pose_graph_depth_forward(
        pose2fix, pose2opt, pos_Tw, K, kp1, kp2, kp1_depth, kp2_depth)
    out = jax.block_until_ready(out)

    ref = _reference(pose2fix, pose2opt, pos_Tw, K, kp1, kp2, kp1_depth, kp2_depth)
    assert out.shape == (2 * N, 3), out.shape
    np.testing.assert_allclose(np.asarray(out), np.asarray(ref), rtol=1e-4, atol=1e-3)

    print("KERNEL_OK")
</pallas_src>

<mosaic_0001>
module attributes {stable_mosaic.version = 11 : i64} {
  func.func @_reproj_kernel(%arg0: i32, %arg1: memref<28xf32, #tpu.memory_space<smem>>, %arg2: memref<3x8x128xf32, #tpu.memory_space<vmem>>, %arg3: memref<6x8x128xf32, #tpu.memory_space<vmem>>, %arg4: memref<6x8x128xf32, #tpu.memory_space<vmem>>) attributes {dimension_semantics = [#tpu.dimension_semantics<parallel>], iteration_bounds = array<i64: 1>, scalar_prefetch = 1 : i64, scratch_operands = 0 : i64, tpu.core_type = #tpu.core_type<tc>, window_params = [{transform_indices = @transform_0, window_bounds = array<i64: 3, 8, 128>}, {transform_indices = @transform_1, window_bounds = array<i64: 6, 8, 128>}, {transform_indices = @transform_2, window_bounds = array<i64: 6, 8, 128>}]} {
    %c24 = arith.constant 24 : index
    %0 = memref.load %arg1[%c24] : memref<28xf32, #tpu.memory_space<smem>>
    %c25 = arith.constant 25 : index
    %1 = memref.load %arg1[%c25] : memref<28xf32, #tpu.memory_space<smem>>
    %c26 = arith.constant 26 : index
    %2 = memref.load %arg1[%c26] : memref<28xf32, #tpu.memory_space<smem>>
    %c27 = arith.constant 27 : index
    %3 = memref.load %arg1[%c27] : memref<28xf32, #tpu.memory_space<smem>>
    %c0 = arith.constant 0 : index
    %4 = memref.load %arg1[%c0] : memref<28xf32, #tpu.memory_space<smem>>
    %c1 = arith.constant 1 : index
    %5 = memref.load %arg1[%c1] : memref<28xf32, #tpu.memory_space<smem>>
    %c2 = arith.constant 2 : index
    %6 = memref.load %arg1[%c2] : memref<28xf32, #tpu.memory_space<smem>>
    %c3 = arith.constant 3 : index
    %7 = memref.load %arg1[%c3] : memref<28xf32, #tpu.memory_space<smem>>
    %c4 = arith.constant 4 : index
    %8 = memref.load %arg1[%c4] : memref<28xf32, #tpu.memory_space<smem>>
    %c5 = arith.constant 5 : index
    %9 = memref.load %arg1[%c5] : memref<28xf32, #tpu.memory_space<smem>>
    %c6 = arith.constant 6 : index
    %10 = memref.load %arg1[%c6] : memref<28xf32, #tpu.memory_space<smem>>
    %c7 = arith.constant 7 : index
    %11 = memref.load %arg1[%c7] : memref<28xf32, #tpu.memory_space<smem>>
    %c8 = arith.constant 8 : index
    %12 = memref.load %arg1[%c8] : memref<28xf32, #tpu.memory_space<smem>>
    %c9 = arith.constant 9 : index
    %13 = memref.load %arg1[%c9] : memref<28xf32, #tpu.memory_space<smem>>
    %c10 = arith.constant 10 : index
    %14 = memref.load %arg1[%c10] : memref<28xf32, #tpu.memory_space<smem>>
    %c11 = arith.constant 11 : index
    %15 = memref.load %arg1[%c11] : memref<28xf32, #tpu.memory_space<smem>>
    %c0_0 = arith.constant 0 : index
    %c0_1 = arith.constant 0 : index
    %c0_2 = arith.constant 0 : index
    %16 = vector.load %arg2[%c0_0, %c0_1, %c0_2] : memref<3x8x128xf32, #tpu.memory_space<vmem>>, vector<1x8x128xf32>
    %17 = vector.shape_cast %16 : vector<1x8x128xf32> to vector<8x128xf32>
    %c1_3 = arith.constant 1 : index
    %c0_4 = arith.constant 0 : index
    %c0_5 = arith.constant 0 : index
    %18 = vector.load %arg2[%c1_3, %c0_4, %c0_5] : memref<3x8x128xf32, #tpu.memory_space<vmem>>, vector<1x8x128xf32>
    %19 = vector.shape_cast %18 : vector<1x8x128xf32> to vector<8x128xf32>
    %c2_6 = arith.constant 2 : index
    %c0_7 = arith.constant 0 : index
    %c0_8 = arith.constant 0 : index
    %20 = vector.load %arg2[%c2_6, %c0_7, %c0_8] : memref<3x8x128xf32, #tpu.memory_space<vmem>>, vector<1x8x128xf32>
    %21 = vector.shape_cast %20 : vector<1x8x128xf32> to vector<8x128xf32>
    %22 = vector.broadcast %4 : f32 to vector<8x128xf32>
    %23 = arith.mulf %22, %17 : vector<8x128xf32>
    %24 = vector.broadcast %5 : f32 to vector<8x128xf32>
    %25 = arith.mulf %24, %19 : vector<8x128xf32>
    %26 = arith.addf %23, %25 : vector<8x128xf32>
    %27 = vector.broadcast %6 : f32 to vector<8x128xf32>
    %28 = arith.mulf %27, %21 : vector<8x128xf32>
    %29 = arith.addf %26, %28 : vector<8x128xf32>
    %30 = vector.broadcast %13 : f32 to vector<8x128xf32>
    %31 = arith.addf %29, %30 : vector<8x128xf32>
    %32 = vector.broadcast %7 : f32 to vector<8x128xf32>
    %33 = arith.mulf %32, %17 : vector<8x128xf32>
    %34 = vector.broadcast %8 : f32 to vector<8x128xf32>
    %35 = arith.mulf %34, %19 : vector<8x128xf32>
    %36 = arith.addf %33, %35 : vector<8x128xf32>
    %37 = vector.broadcast %9 : f32 to vector<8x128xf32>
    %38 = arith.mulf %37, %21 : vector<8x128xf32>
    %39 = arith.addf %36, %38 : vector<8x128xf32>
    %40 = vector.broadcast %14 : f32 to vector<8x128xf32>
    %41 = arith.addf %39, %40 : vector<8x128xf32>
    %42 = vector.broadcast %10 : f32 to vector<8x128xf32>
    %43 = arith.mulf %42, %17 : vector<8x128xf32>
    %44 = vector.broadcast %11 : f32 to vector<8x128xf32>
    %45 = arith.mulf %44, %19 : vector<8x128xf32>
    %46 = arith.addf %43, %45 : vector<8x128xf32>
    %47 = vector.broadcast %12 : f32 to vector<8x128xf32>
    %48 = arith.mulf %47, %21 : vector<8x128xf32>
    %49 = arith.addf %46, %48 : vector<8x128xf32>
    %50 = vector.broadcast %15 : f32 to vector<8x128xf32>
    %51 = arith.addf %49, %50 : vector<8x128xf32>
    %cst = arith.constant 1.000000e+00 : f32
    %52 = vector.broadcast %cst : f32 to vector<8x128xf32>
    %53 = arith.divf %52, %31 : vector<8x128xf32>
    %54 = vector.broadcast %0 : f32 to vector<8x128xf32>
    %55 = arith.mulf %54, %41 : vector<8x128xf32>
    %56 = arith.mulf %55, %53 : vector<8x128xf32>
    %57 = vector.broadcast %2 : f32 to vector<8x128xf32>
    %58 = arith.addf %56, %57 : vector<8x128xf32>
    %c0_9 = arith.constant 0 : index
    %c0_10 = arith.constant 0 : index
    %c0_11 = arith.constant 0 : index
    %59 = vector.load %arg3[%c0_9, %c0_10, %c0_11] : memref<6x8x128xf32, #tpu.memory_space<vmem>>, vector<1x8x128xf32>
    %60 = vector.shape_cast %59 : vector<1x8x128xf32> to vector<8x128xf32>
    %61 = arith.subf %58, %60 : vector<8x128xf32>
    %c0_12 = arith.constant 0 : index
    %c0_13 = arith.constant 0 : index
    %c0_14 = arith.constant 0 : index
    %62 = vector.load %arg4[%c0_12, %c0_13, %c0_14] : memref<6x8x128xf32, #tpu.memory_space<vmem>>, vector<1x8x128xf32>
    %63 = vector.shape_cast %62 : vector<1x8x128xf32> to vector<8x128xf32>
    %64 = vector.shape_cast %61 : vector<8x128xf32> to vector<1x8x128xf32>
    tpu.vector_store %arg4[%c0_12, %c0_13, %c0_14], %64 {strides = array<i32>} : memref<6x8x128xf32, #tpu.memory_space<vmem>>, vector<1x8x128xf32>,
    %65 = vector.broadcast %1 : f32 to vector<8x128xf32>
    %66 = arith.mulf %65, %51 : vector<8x128xf32>
    %67 = arith.mulf %66, %53 : vector<8x128xf32>
    %68 = vector.broadcast %3 : f32 to vector<8x128xf32>
    %69 = arith.addf %67, %68 : vector<8x128xf32>
    %c1_15 = arith.constant 1 : index
    %c0_16 = arith.constant 0 : index
    %c0_17 = arith.constant 0 : index
    %70 = vector.load %arg3[%c1_15, %c0_16, %c0_17] : memref<6x8x128xf32, #tpu.memory_space<vmem>>, vector<1x8x128xf32>
    %71 = vector.shape_cast %70 : vector<1x8x128xf32> to vector<8x128xf32>
    %72 = arith.subf %69, %71 : vector<8x128xf32>
    %c1_18 = arith.constant 1 : index
    %c0_19 = arith.constant 0 : index
    %c0_20 = arith.constant 0 : index
    %73 = vector.load %arg4[%c1_18, %c0_19, %c0_20] : memref<6x8x128xf32, #tpu.memory_space<vmem>>, vector<1x8x128xf32>
    %74 = vector.shape_cast %73 : vector<1x8x128xf32> to vector<8x128xf32>
    %75 = vector.shape_cast %72 : vector<8x128xf32> to vector<1x8x128xf32>
    tpu.vector_store %arg4[%c1_18, %c0_19, %c0_20], %75 {strides = array<i32>} : memref<6x8x128xf32, #tpu.memory_space<vmem>>, vector<1x8x128xf32>,
    %c2_21 = arith.constant 2 : index
    %c0_22 = arith.constant 0 : index
    %c0_23 = arith.constant 0 : index
    %76 = vector.load %arg3[%c2_21, %c0_22, %c0_23] : memref<6x8x128xf32, #tpu.memory_space<vmem>>, vector<1x8x128xf32>
    %77 = vector.shape_cast %76 : vector<1x8x128xf32> to vector<8x128xf32>
    %78 = arith.subf %31, %77 : vector<8x128xf32>
    %c2_24 = arith.constant 2 : index
    %c0_25 = arith.constant 0 : index
    %c0_26 = arith.constant 0 : index
    %79 = vector.load %arg4[%c2_24, %c0_25, %c0_26] : memref<6x8x128xf32, #tpu.memory_space<vmem>>, vector<1x8x128xf32>
    %80 = vector.shape_cast %79 : vector<1x8x128xf32> to vector<8x128xf32>
    %81 = vector.shape_cast %78 : vector<8x128xf32> to vector<1x8x128xf32>
    tpu.vector_store %arg4[%c2_24, %c0_25, %c0_26], %81 {strides = array<i32>} : memref<6x8x128xf32, #tpu.memory_space<vmem>>, vector<1x8x128xf32>,
    %c12 = arith.constant 12 : index
    %82 = memref.load %arg1[%c12] : memref<28xf32, #tpu.memory_space<smem>>
    %c13 = arith.constant 13 : index
    %83 = memref.load %arg1[%c13] : memref<28xf32, #tpu.memory_space<smem>>
    %c14 = arith.constant 14 : index
    %84 = memref.load %arg1[%c14] : memref<28xf32, #tpu.memory_space<smem>>
    %c15 = arith.constant 15 : index
    %85 = memref.load %arg1[%c15] : memref<28xf32, #tpu.memory_space<smem>>
    %c16 = arith.constant 16 : index
    %86 = memref.load %arg1[%c16] : memref<28xf32, #tpu.memory_space<smem>>
    %c17 = arith.constant 17 : index
    %87 = memref.load %arg1[%c17] : memref<28xf32, #tpu.memory_space<smem>>
    %c18 = arith.constant 18 : index
    %88 = memref.load %arg1[%c18] : memref<28xf32, #tpu.memory_space<smem>>
    %c19 = arith.constant 19 : index
    %89 = memref.load %arg1[%c19] : memref<28xf32, #tpu.memory_space<smem>>
    %c20 = arith.constant 20 : index
    %90 = memref.load %arg1[%c20] : memref<28xf32, #tpu.memory_space<smem>>
    %c21 = arith.constant 21 : index
    %91 = memref.load %arg1[%c21] : memref<28xf32, #tpu.memory_space<smem>>
    %c22 = arith.constant 22 : index
    %92 = memref.load %arg1[%c22] : memref<28xf32, #tpu.memory_space<smem>>
    %c23 = arith.constant 23 : index
    %93 = memref.load %arg1[%c23] : memref<28xf32, #tpu.memory_space<smem>>
    %c0_27 = arith.constant 0 : index
    %c0_28 = arith.constant 0 : index
    %c0_29 = arith.constant 0 : index
    %94 = vector.load %arg2[%c0_27, %c0_28, %c0_29] : memref<3x8x128xf32, #tpu.memory_space<vmem>>, vector<1x8x128xf32>
    %95 = vector.shape_cast %94 : vector<1x8x128xf32> to vector<8x128xf32>
    %c1_30 = arith.constant 1 : index
    %c0_31 = arith.constant 0 : index
    %c0_32 = arith.constant 0 : index
    %96 = vector.load %arg2[%c1_30, %c0_31, %c0_32] : memref<3x8x128xf32, #tpu.memory_space<vmem>>, vector<1x8x128xf32>
    %97 = vector.shape_cast %96 : vector<1x8x128xf32> to vector<8x128xf32>
    %c2_33 = arith.constant 2 : index
    %c0_34 = arith.constant 0 : index
    %c0_35 = arith.constant 0 : index
    %98 = vector.load %arg2[%c2_33, %c0_34, %c0_35] : memref<3x8x128xf32, #tpu.memory_space<vmem>>, vector<1x8x128xf32>
    %99 = vector.shape_cast %98 : vector<1x8x128xf32> to vector<8x128xf32>
    %100 = vector.broadcast %82 : f32 to vector<8x128xf32>
    %101 = arith.mulf %100, %95 : vector<8x128xf32>
    %102 = vector.broadcast %83 : f32 to vector<8x128xf32>
    %103 = arith.mulf %102, %97 : vector<8x128xf32>
    %104 = arith.addf %101, %103 : vector<8x128xf32>
    %105 = vector.broadcast %84 : f32 to vector<8x128xf32>
    %106 = arith.mulf %105, %99 : vector<8x128xf32>
    %107 = arith.addf %104, %106 : vector<8x128xf32>
    %108 = vector.broadcast %91 : f32 to vector<8x128xf32>
    %109 = arith.addf %107, %108 : vector<8x128xf32>
    %110 = vector.broadcast %85 : f32 to vector<8x128xf32>
    %111 = arith.mulf %110, %95 : vector<8x128xf32>
    %112 = vector.broadcast %86 : f32 to vector<8x128xf32>
    %113 = arith.mulf %112, %97 : vector<8x128xf32>
    %114 = arith.addf %111, %113 : vector<8x128xf32>
    %115 = vector.broadcast %87 : f32 to vector<8x128xf32>
    %116 = arith.mulf %115, %99 : vector<8x128xf32>
    %117 = arith.addf %114, %116 : vector<8x128xf32>
    %118 = vector.broadcast %92 : f32 to vector<8x128xf32>
    %119 = arith.addf %117, %118 : vector<8x128xf32>
    %120 = vector.broadcast %88 : f32 to vector<8x128xf32>
    %121 = arith.mulf %120, %95 : vector<8x128xf32>
    %122 = vector.broadcast %89 : f32 to vector<8x128xf32>
    %123 = arith.mulf %122, %97 : vector<8x128xf32>
    %124 = arith.addf %121, %123 : vector<8x128xf32>
    %125 = vector.broadcast %90 : f32 to vector<8x128xf32>
    %126 = arith.mulf %125, %99 : vector<8x128xf32>
    %127 = arith.addf %124, %126 : vector<8x128xf32>
    %128 = vector.broadcast %93 : f32 to vector<8x128xf32>
    %129 = arith.addf %127, %128 : vector<8x128xf32>
    %cst_36 = arith.constant 1.000000e+00 : f32
    %130 = vector.broadcast %cst_36 : f32 to vector<8x128xf32>
    %131 = arith.divf %130, %109 : vector<8x128xf32>
    %132 = vector.broadcast %0 : f32 to vector<8x128xf32>
    %133 = arith.mulf %132, %119 : vector<8x128xf32>
    %134 = arith.mulf %133, %131 : vector<8x128xf32>
    %135 = vector.broadcast %2 : f32 to vector<8x128xf32>
    %136 = arith.addf %134, %135 : vector<8x128xf32>
    %c3_37 = arith.constant 3 : index
    %c0_38 = arith.constant 0 : index
    %c0_39 = arith.constant 0 : index
    %137 = vector.load %arg3[%c3_37, %c0_38, %c0_39] : memref<6x8x128xf32, #tpu.memory_space<vmem>>, vector<1x8x128xf32>
    %138 = vector.shape_cast %137 : vector<1x8x128xf32> to vector<8x128xf32>
    %139 = arith.subf %136, %138 : vector<8x128xf32>
    %c3_40 = arith.constant 3 : index
    %c0_41 = arith.constant 0 : index
    %c0_42 = arith.constant 0 : index
    %140 = vector.load %arg4[%c3_40, %c0_41, %c0_42] : memref<6x8x128xf32, #tpu.memory_space<vmem>>, vector<1x8x128xf32>
    %141 = vector.shape_cast %140 : vector<1x8x128xf32> to vector<8x128xf32>
    %142 = vector.shape_cast %139 : vector<8x128xf32> to vector<1x8x128xf32>
    tpu.vector_store %arg4[%c3_40, %c0_41, %c0_42], %142 {strides = array<i32>} : memref<6x8x128xf32, #tpu.memory_space<vmem>>, vector<1x8x128xf32>,
    %143 = vector.broadcast %1 : f32 to vector<8x128xf32>
    %144 = arith.mulf %143, %129 : vector<8x128xf32>
    %145 = arith.mulf %144, %131 : vector<8x128xf32>
    %146 = vector.broadcast %3 : f32 to vector<8x128xf32>
    %147 = arith.addf %145, %146 : vector<8x128xf32>
    %c4_43 = arith.constant 4 : index
    %c0_44 = arith.constant 0 : index
    %c0_45 = arith.constant 0 : index
    %148 = vector.load %arg3[%c4_43, %c0_44, %c0_45] : memref<6x8x128xf32, #tpu.memory_space<vmem>>, vector<1x8x128xf32>
    %149 = vector.shape_cast %148 : vector<1x8x128xf32> to vector<8x128xf32>
    %150 = arith.subf %147, %149 : vector<8x128xf32>
    %c4_46 = arith.constant 4 : index
    %c0_47 = arith.constant 0 : index
    %c0_48 = arith.constant 0 : index
    %151 = vector.load %arg4[%c4_46, %c0_47, %c0_48] : memref<6x8x128xf32, #tpu.memory_space<vmem>>, vector<1x8x128xf32>
    %152 = vector.shape_cast %151 : vector<1x8x128xf32> to vector<8x128xf32>
    %153 = vector.shape_cast %150 : vector<8x128xf32> to vector<1x8x128xf32>
    tpu.vector_store %arg4[%c4_46, %c0_47, %c0_48], %153 {strides = array<i32>} : memref<6x8x128xf32, #tpu.memory_space<vmem>>, vector<1x8x128xf32>,
    %c5_49 = arith.constant 5 : index
    %c0_50 = arith.constant 0 : index
    %c0_51 = arith.constant 0 : index
    %154 = vector.load %arg3[%c5_49, %c0_50, %c0_51] : memref<6x8x128xf32, #tpu.memory_space<vmem>>, vector<1x8x128xf32>
    %155 = vector.shape_cast %154 : vector<1x8x128xf32> to vector<8x128xf32>
    %156 = arith.subf %109, %155 : vector<8x128xf32>
    %c5_52 = arith.constant 5 : index
    %c0_53 = arith.constant 0 : index
    %c0_54 = arith.constant 0 : index
    %157 = vector.load %arg4[%c5_52, %c0_53, %c0_54] : memref<6x8x128xf32, #tpu.memory_space<vmem>>, vector<1x8x128xf32>
    %158 = vector.shape_cast %157 : vector<1x8x128xf32> to vector<8x128xf32>
    %159 = vector.shape_cast %156 : vector<8x128xf32> to vector<1x8x128xf32>
    tpu.vector_store %arg4[%c5_52, %c0_53, %c0_54], %159 {strides = array<i32>} : memref<6x8x128xf32, #tpu.memory_space<vmem>>, vector<1x8x128xf32>,
    return
  }
  func.func @transform_0(%arg0: i32, %arg1: memref<28xf32, #tpu.memory_space<smem>>) -> (i32, i32, i32) {
    %c0_i32 = arith.constant 0 : i32
    %c0_i32_0 = arith.constant 0 : i32
    %c0_i32_1 = arith.constant 0 : i32
    return %c0_i32, %arg0, %c0_i32_0 : i32, i32, i32
  }
  func.func @transform_1(%arg0: i32, %arg1: memref<28xf32, #tpu.memory_space<smem>>) -> (i32, i32, i32) {
    %c0_i32 = arith.constant 0 : i32
    %c0_i32_0 = arith.constant 0 : i32
    %c0_i32_1 = arith.constant 0 : i32
    return %c0_i32, %arg0, %c0_i32_0 : i32, i32, i32
  }
  func.func @transform_2(%arg0: i32, %arg1: memref<28xf32, #tpu.memory_space<smem>>) -> (i32, i32, i32) {
    %c0_i32 = arith.constant 0 : i32
    %c0_i32_0 = arith.constant 0 : i32
    %c0_i32_1 = arith.constant 0 : i32
    return %c0_i32, %arg0, %c0_i32_0 : i32, i32, i32
  }
}

</mosaic_0001>

<bundles_post_ra>
// kernel: tpu_custom_call.1
= control target key start
LH: loop header
LB: loop body
LE: loop exit
PB: predicated region body
PF: predicated region fallthrough
CT: control target
= control target key end

     0   :  { %s372_s15 = smov [#allocation3]   ;;  %s507_s0 = inlined_call_operand.hbm [shape: f32[28], index: 0, kind: input, shape index: {}]   ;;  %s508_s1 = inlined_call_operand.hbm [shape: f32[3,8,128], index: 1, kind: input, shape index: {}]   ;;  %s509_s2 = inlined_call_operand.hbm [shape: f32[6,8,128], index: 2, kind: input, shape index: {}]   ;;  %s510_s3 = inlined_call_operand.hbm [shape: f32[6,8,128], index: 3, kind: output, shape index: {}]  }
   0x1   :  { %s9_s14 = sshll.u32 %s507_s0, 4  ;;  %s10_s14 = int_to_ptr.hbm [resolvable:$true] %s9_s14 }
   0x2   :  { %12 = dma.hbm_to_smem %s10_s14, 16, %s372_s15, [#allocation2] }
   0x3   :  { %364 = dma.done.wait [#allocation2], 16 }
   0x4   :  { %365 = vsyncadd [#allocation2], 4294967280 }
   0x5   :  { %15 = sfence }
   0x6   :  { %16 = vsyncpa [#allocation5], 0 }
   0x7   :  { %17 = vsyncpa [#allocation8], 0 }
   0x8   :  { %18 = vsyncpa [#allocation6], 0  ;;  %s23_s18 = sshll.u32 %s508_s1, 4  ;;  %s373_s19 = smov [#allocation4]   ;;  %s24_s18 = int_to_ptr.hbm [resolvable:$true] %s23_s18 }
   0x9   :  { %s25_s20 = sshll.u32 %s373_s19, 4  ;;  %s36_s0 = sshll.u32 %s509_s2, 4  ;;  %s26_s20 = int_to_ptr.vmem [resolvable:$true] %s25_s20  ;;  %s37_s0 = int_to_ptr.hbm [resolvable:$true] %s36_s0 }
   0xa   :  { %s374_s23 = smov 128   ;;  %s375_s24 = smov 8  }
   0xb   :  { %31 = dma.hbm_to_vmem [thread:$0]  %s24_s18, 384, %s26_s20, [#allocation5], %s374_s23, %s374_s23, %s375_s24  }
   0xc   :  { %s376_s25 = smov [#allocation7]  }
   0xd   :  { %s38_s26 = sshll.u32 %s376_s25, 4  ;;  %s39_s26 = int_to_ptr.vmem [resolvable:$true] %s38_s26 }
   0xe   :  { %44 = dma.hbm_to_vmem [thread:$0]  %s37_s0, 768, %s39_s26, [#allocation8], %s374_s23, %s374_s23, %s375_s24  }
   0xf   :  { %366 = dma.done.wait [#allocation5], 384  }
  0x10   :  { %367 = vsyncadd [#allocation5], 4294966912 }
  0x11   :  { %368 = dma.done.wait [#allocation8], 768  }
  0x12   :  { %369 = vsyncadd [#allocation8], 4294966528  ;;  %s413_s1 = sld [smem:[#allocation3 + $0x18]]  ;;  %v415_v0 = vld [vmem:[#allocation4] sm:$0xff]  ;;  %v417_v1 = vld [vmem:[#allocation4 + $0x8] sm:$0xff] }
  0x13   :  { %s57_s2 = sld [smem:[#allocation3]]  ;;  %v419_v2 = vld [vmem:[#allocation4 + $0x10] sm:$0xff]  ;;  %v138_v18 = vld [vmem:[#allocation7 + $0x10] sm:$0xff] }
  0x14   :  { %s247_s27 = sld [smem:[#allocation3 + $0x1]] }
  0x15   :  { %s248_s28 = sld [smem:[#allocation3 + $0x2]] }
  0x16   :  { %s249_s29 = sld [smem:[#allocation3 + $0x3]] }
  0x17   :  { %s250_s30 = sld [smem:[#allocation3 + $0x4]] }
  0x18   :  { %s251_s4 = sld [smem:[#allocation3 + $0x5]]  ;;  %v119_v42 = vstv %s413_s1 }
  0x19   :  { %s255_s5 = sld [smem:[#allocation3 + $0x9]]  ;;  %v74_v3 = vstv %s57_s2  ;;  %s377_s2 = smov [#allocation9]  }
  0x1a   :  { %s421_s6 = sld [smem:[#allocation3 + $0x1a]]  ;;  %v75_v4 = vmul.f32 %v74_v3, %v415_v0  ;;  %v76_v5 = vstv %s247_s27  ;;  %s227_s27 = sshll.u32 %s377_s2, 4  ;;  %s228_s27 = int_to_ptr.vmem [resolvable:$true] %s227_s27 }
  0x1b   :  { %s424_s7 = sld [smem:[#allocation3 + $0xa]]  ;;  %v77_v6 = vmul.f32 %v76_v5, %v417_v1  ;;  %v79_v7 = vstv %s248_s28 }
  0x1c   :  { %v80_v8 = vmul.f32 %v79_v7, %v419_v2  ;;  %v84_v9 = vstv %s249_s29  ;;  %s428_s8 = sld [smem:[#allocation3 + $0x19]] }
  0x1d   :  { %v78_v10 = vadd.f32 %v77_v6, %v75_v4  ;;  %v86_v11 = vstv %s250_s30  ;;  %s252_s9 = sld [smem:[#allocation3 + $0x6]]  ;;  %v85_v14 = vmul.f32 %v84_v9, %v415_v0  ;;  %s229_s30 = sshll.u32 %s510_s3, 4  ;;  %s230_s30 = int_to_ptr.hbm [resolvable:$true] %s229_s30 }
  0x1e   :  { %s253_s10 = sld [smem:[#allocation3 + $0x7]]  ;;  %v87_v15 = vmul.f32 %v86_v11, %v417_v1  ;;  %v89_v16 = vstv %s251_s4  ;;  %v219_v11 = vld [vmem:[#allocation7 + $0x28] sm:$0xff] }
  0x1f   :  { %v81_v12 = vadd.f32 %v80_v8, %v78_v10  ;;  %v82_v13 = vstv %s255_s5  ;;  %s254_s11 = sld [smem:[#allocation3 + $0x8]]  ;;  %v90_v20 = vmul.f32 %v89_v16, %v419_v2 }
  0x20   :  { %s432_s12 = sld [smem:[#allocation3 + $0xb]]  ;;  %v88_v19 = vadd.f32 %v87_v15, %v85_v14 }
  0x21   :  { %v83_v17 = vadd.f32 %v82_v13, %v81_v12  ;;  %s258_s13 = sld [smem:[#allocation3 + $0xc]]  ;;  %v92_v31 = vstv %s424_s7  ;;  %v122_v13 = vstv %s421_s6 }
  0x22   :  { %s259_s14 = sld [smem:[#allocation3 + $0xd]]  ;;  %v91_v27 = vadd.f32 %v90_v20, %v88_v19  ;;  %v127_v51 = vstv %s428_s8  ;;  %v133_v19 = vld [vmem:[#allocation7 + $0x8] sm:$0xff] }
  0x23   :  { %276 = vrcp.f32 %v83_v17  ;;  %s435_s15 = sld [smem:[#allocation3 + $0xe]]  ;;  %v94_v21 = vstv %s252_s9  ;;  %v139_v23 = vsub.f32 %v83_v17, %v138_v18  ;;  %v113_v32 = vand.u32 2147483647, %v83_v17  ;;  %v124_v18 = vld [vmem:[#allocation7] sm:$0xff] }
  0x24   :  { %v96_v22 = vstv %s253_s10  ;;  %s437_s16 = sld [smem:[#allocation3 + $0xf]]  ;;  %v95_v24 = vmul.f32 %v94_v21, %v415_v0  ;;  %v115_v41 = vand.u32 2147483648, %v83_v17  ;;  %v93_v44 = vadd.f32 %v92_v31, %v91_v27 }
  0x25   :  { %v97_v25 = vmul.f32 %v96_v22, %v417_v1  ;;  %s441_s17 = sld [smem:[#allocation3 + $0x10]]  ;;  %v99_v26 = vstv %s254_s11  ;;  %141 = vst [vmem:[#allocation9 + $0x10] sm:$0xff] %v139_v23  ;;  %vm109_vm0 = vweird.f32 %v83_v17  ;;  %vm465_vm2 = vcmp.eq.f32.partialorder %v113_v32, 8.507059e+37 }
  0x26   :  { %s443_s18 = sld [smem:[#allocation3 + $0x11]]  ;;  %v100_v29 = vmul.f32 %v99_v26, %v419_v2  ;;  %v102_v37 = vstv %s432_s12  ;;  %v116_v59 = vor.u32 1.1754944e-38, %v115_v41  ;;  %v120_v60 = vmul.f32 %v119_v42, %v93_v44  ;;  %v206_v44 = vld [vmem:[#allocation7 + $0x18] sm:$0xff] }
  0x27   :  { %v98_v28 = vadd.f32 %v97_v25, %v95_v24  ;;  %s446_s19 = sld [smem:[#allocation3 + $0x15]]  ;;  %v157_v30 = vstv %s258_s13 }
  0x28   :  { %s449_s20 = sld [smem:[#allocation3 + $0x1b]]  ;;  %v158_v33 = vmul.f32 %v157_v30, %v415_v0  ;;  %v159_v34 = vstv %s259_s14 }
  0x29   :  { %v277_v35 = vpop.eup %276  ;;  %v101_v36 = vadd.f32 %v100_v29, %v98_v28  ;;  %v160_v38 = vmul.f32 %v159_v34, %v417_v1  ;;  %v162_v39 = vstv %s435_s15  ;;  %s455_s21 = sld [smem:[#allocation3 + $0x12]] }
  0x2a   :  { %v105_v40 = vmul.f32 %v277_v35, %v83_v17  ;;  %v163_v43 = vmul.f32 %v162_v39, %v419_v2  ;;  %s459_s22 = sld [smem:[#allocation3 + $0x13]]  ;;  %v167_v46 = vstv %s437_s16  ;;  %vm110_vm1 = vweird.f32 %v277_v35 }
  0x2b   :  { %v161_v45 = vadd.f32 %v160_v38, %v158_v33  ;;  %v169_v47 = vstv %s441_s17  ;;  %s463_s0 = sld [smem:[#allocation3 + $0x14]]  ;;  %v103_v49 = vadd.f32 %v102_v37, %v101_v36  ;;  %v168_v55 = vmul.f32 %v167_v46, %v415_v0  ;;  %vm476_vm3 = vmor %vm109_vm0, %vm110_vm1 }
  0x2c   :  { %v106_v48 = vsub.f32 1.0, %v105_v40  ;;  %s471_s25 = sld [smem:[#allocation3 + $0x16]]  ;;  %v170_v56 = vmul.f32 %v169_v47, %v417_v1  ;;  %v172_v57 = vstv %s443_s18 }
  0x2d   :  { %v164_v52 = vadd.f32 %v163_v43, %v161_v45  ;;  %v165_v53 = vstv %s446_s19  ;;  %s482_s26 = sld [smem:[#allocation3 + $0x17]]  ;;  %v128_v3 = vmul.f32 %v127_v51, %v103_v49  ;;  %v173_v6 = vmul.f32 %v172_v57, %v419_v2  ;;  %v214_v45 = vld [vmem:[#allocation7 + $0x20] sm:$0xff] }
  0x2e   :  { %v107_v54 = vmul.f32 %v277_v35, %v106_v48  ;;  %v171_v8 = vadd.f32 %v170_v56, %v168_v55  ;;  %v130_v14 = vstv %s449_s20 }
  0x2f   :  { %v166_v61 = vadd.f32 %v165_v53, %v164_v52  ;;  %v177_v62 = vstv %s455_s21 }
  0x30   :  { %v108_v63 = vadd.f32 %v277_v35, %v107_v54  ;;  %v178_v4 = vmul.f32 %v177_v62, %v415_v0  ;;  %v179_v5 = vstv %s459_s22 }
  0x31   :  { %278 = vrcp.f32 %v166_v61  ;;  %v180_v9 = vmul.f32 %v179_v5, %v417_v1  ;;  %v182_v10 = vstv %s463_s0  ;;  %v220_v20 = vsub.f32 %v166_v61, %v219_v11 }
  0x32   :  { %v112_v7 = vsel %vm476_vm3, %v277_v35, %v108_v63  ;;  %v183_v0 = vmul.f32 %v182_v10, %v419_v2  ;;  %v174_v1 = vadd.f32 %v173_v6, %v171_v8  ;;  %v175_v25 = vstv %s471_s25 }
  0x33   :  { %v117_v12 = vsel %vm465_vm2, %v116_v59, %v112_v7  ;;  %v181_v17 = vadd.f32 %v180_v9, %v178_v4  ;;  %v185_v26 = vstv %s482_s26  ;;  %222 = vst [vmem:[#allocation9 + $0x28] sm:$0xff] %v220_v20  ;;  %vm192_vm4 = vweird.f32 %v166_v61 }
  0x34   :  { %v121_v15 = vmul.f32 %v120_v60, %v117_v12  ;;  %v129_v16 = vmul.f32 %v128_v3, %v117_v12  ;;  %v196_v2 = vand.u32 2147483647, %v166_v61  ;;  %v198_v30 = vand.u32 2147483648, %v166_v61 }
  0x35   :  { %v184_v23 = vadd.f32 %v183_v0, %v181_v17  ;;  %v176_v31 = vadd.f32 %v175_v25, %v174_v1 }
  0x36   :  { %v123_v21 = vadd.f32 %v122_v13, %v121_v15  ;;  %v131_v22 = vadd.f32 %v130_v14, %v129_v16  ;;  %v199_v35 = vor.u32 1.1754944e-38, %v198_v30  ;;  %vm197_vm7 = vcmp.eq.f32.partialorder %v196_v2, 8.507059e+37 }
  0x37   :  { %v279_v24 = vpop.eup %278  ;;  %v186_v33 = vadd.f32 %v185_v26, %v184_v23  ;;  %v202_v37 = vmul.f32 %v176_v31, %v119_v42 }
  0x38   :  { %v125_v27 = vsub.f32 %v123_v21, %v124_v18  ;;  %v134_v28 = vsub.f32 %v131_v22, %v133_v19  ;;  %v188_v29 = vmul.f32 %v279_v24, %v166_v61  ;;  %vm193_vm5 = vweird.f32 %v279_v24 }
  0x39   :  { %vm194_vm6 = vmor %vm192_vm4, %vm193_vm5  ;;  %v210_v38 = vmul.f32 %v186_v33, %v127_v51 }
  0x3a   :  { %126 = vst [vmem:[#allocation9] sm:$0xff] %v125_v27  ;;  %v189_v32 = vsub.f32 1.0, %v188_v29 }
  0x3b   :  { %136 = vst [vmem:[#allocation9 + $0x8] sm:$0xff] %v134_v28 }
  0x3c   :  { %v190_v34 = vmul.f32 %v279_v24, %v189_v32 }
  0x3e   :  { %v191_v36 = vadd.f32 %v279_v24, %v190_v34 }
  0x40   :  { %v195_v39 = vsel %vm194_vm6, %v279_v24, %v191_v36 }
  0x41   :  { %v200_v40 = vsel %vm197_vm7, %v199_v35, %v195_v39 }
  0x42   :  { %v203_v41 = vmul.f32 %v202_v37, %v200_v40  ;;  %v211_v43 = vmul.f32 %v210_v38, %v200_v40 }
  0x44   :  { %v204_v46 = vadd.f32 %v203_v41, %v122_v13  ;;  %v212_v47 = vadd.f32 %v211_v43, %v130_v14 }
  0x46   :  { %v207_v48 = vsub.f32 %v204_v46, %v206_v44  ;;  %v215_v49 = vsub.f32 %v212_v47, %v214_v45 }
  0x48   :  { %209 = vst [vmem:[#allocation9 + $0x18] sm:$0xff] %v207_v48 }
  0x49   :  { %217 = vst [vmem:[#allocation9 + $0x20] sm:$0xff] %v215_v49 }
  0x4a   :  { %235 = dma.vmem_to_hbm [thread:$0]  %s228_s27, 768, %s230_s30, [#allocation6], %s374_s23, %s374_s23, %s375_s24  }
  0x4b   :  { %370 = dma.done.wait [#allocation6], 768  }
  0x4c   :  { %371 = vsyncadd [#allocation6], 4294966528 }
  0x4d   :  { %240 = vsyncpa [#allocation5], 1 }
  0x4e   :  { %241 = vsyncpa [#allocation8], 1 }
  0x4f   :  { %242 = vsyncpa [#allocation6], 1 }

</bundles_post_ra>
